<compile_context>
chip_gen: v6e
topology: v6e:2x2x1
jax: 0.10.0
libtpu: 0.0.40
codegen_flags: <defaults>
</compile_context>

<pallas_src>
import jax
import jax.numpy as jnp
from jax.experimental import pallas as pl
from jax.experimental.pallas import tpu as pltpu

# ---- hyperparameters (consistent with the module __init__ signature) ----
N_WORD_DIM   = 32   # n_word_dim (D)
N_FILTERS    = 16   # n_filters  (F)
FILTER_WIDTH = 3    # filter_width (W)
HIDDEN       = 32   # hidden_layer_units (H)
NUM_CLASSES  = 2    # num_classes (C)

# ---- packed parameter-buffer layout (rows x 128 lanes, f32) ----
_KCONV   = 2 * N_FILTERS * FILTER_WIDTH            # packed conv-weight columns (W*2F)
_R_WCONV = 0                                       # (D, W*2F)
_R_W1    = _R_WCONV + N_WORD_DIM                   # (2F, H)
_R_W2    = _R_W1 + 2 * N_FILTERS                   # (H, C)
_R_CB    = _R_W2 + HIDDEN                          # (1, F)
_R_B1    = _R_CB + 1                               # (1, H)
_R_B2    = _R_B1 + 1                               # (1, C)
_P_ROWS  = ((_R_B2 + 1 + 7) // 8) * 8
_P_COLS  = 128


def _softmax_axis1(x):
    # softmax over the (sublane) time axis of a (bt, L, 1) tensor.
    m = jnp.max(x, axis=1, keepdims=True)
    e = jnp.exp(x - m)
    return e * pl.reciprocal(jnp.sum(e, axis=1, keepdims=True), approx=True)


def _log_softmax_last(x):
    m = jnp.max(x, axis=-1, keepdims=True)
    s = x - m
    return s - jnp.log(jnp.sum(jnp.exp(s), axis=-1, keepdims=True))


def smcnn_kernel(s1_ref, s2_ref, p_ref, out_ref):
    D, F, W, H, C = N_WORD_DIM, N_FILTERS, FILTER_WIDTH, HIDDEN, NUM_CLASSES
    bt, _, L = s1_ref.shape
    lout = L - W + 1

    # In-kernel layout swap (VMEM-local, no extra HBM pass): (bt, D, L) -> (bt, L, D).
    s1 = jnp.swapaxes(s1_ref[...].astype(jnp.float32), 1, 2)
    s2 = jnp.swapaxes(s2_ref[...].astype(jnp.float32), 1, 2)

    # ---- packed parameters: static slices of the single resident VMEM buffer ----
    w_conv = p_ref[_R_WCONV:_R_WCONV + D, 0:_KCONV]     # (D, W*2F)
    w1     = p_ref[_R_W1:_R_W1 + 2 * F, 0:H]            # (2F, H)
    w2     = p_ref[_R_W2:_R_W2 + H, 0:C]                # (H, C)
    conv_b = p_ref[_R_CB:_R_CB + 1, 0:F]                # (1, F)
    b1     = p_ref[_R_B1:_R_B1 + 1, 0:H]                # (1, H)
    b2     = p_ref[_R_B2:_R_B2 + 1, 0:C]                # (1, C)

    # -------- concat_attention ('basic') without the (bt, L, L) matrix --------
    # attn[b,i,j] = inv1[b,i] * inv2[b,j] * <s1[b,i,:], s2[b,j,:]>, and only its
    # row / column sums feed the softmaxes, so fold the j (resp. i) sum into t2 / t1.
    # NOTE: zero-norm (all-pad) tokens give inf*0 = NaN, exactly like the PyTorch path.
    inv1 = jax.lax.rsqrt(jnp.sum(s1 * s1, axis=2, keepdims=True))       # (bt, L, 1)
    inv2 = jax.lax.rsqrt(jnp.sum(s2 * s2, axis=2, keepdims=True))       # (bt, L, 1)
    t1 = jnp.sum(inv1 * s1, axis=1, keepdims=True)                      # (bt, 1, D)
    t2 = jnp.sum(inv2 * s2, axis=1, keepdims=True)                      # (bt, 1, D)
    r1 = inv1 * jnp.sum(s1 * t2, axis=2, keepdims=True)                 # (bt, L, 1)
    r2 = inv2 * jnp.sum(s2 * t1, axis=2, keepdims=True)                 # (bt, L, 1)
    wv1 = _softmax_axis1(r1)                                            # (bt, L, 1)
    wv2 = _softmax_axis1(r2)
    # TODO(synk): the 'idf' attention branch needs python string splitting / dict lookups
    # on raw sentences -> not expressible inside a kernel.

    # -------- Conv1d(2D, F, W) + Tanh, then max over time (per sentence) --------
    # Per tap, two lane-aligned matmuls: one for the attention-weighted channel half
    # (scale factored out of the contraction and applied afterwards), one for the raw
    # half. No channel concat, no (bt, L, W*2F) intermediate.
    def conv_pool(s, wv):
        s2d = s.reshape(bt * L, D)
        wv_f = jnp.broadcast_to(wv, (bt, L, F))          # hoisted out of the tap loop
        acc = jnp.zeros((bt, lout, F), jnp.float32)
        for w in range(W):                               # static unroll (W=3)
            wa = w_conv[:, 2 * F * w:2 * F * w + F]          # (D, F) weighted-channel taps
            wr = w_conv[:, 2 * F * w + F:2 * F * (w + 1)]    # (D, F) raw-channel taps
            za = jnp.dot(s2d, wa, preferred_element_type=jnp.float32).reshape(bt, L, F)
            zr = jnp.dot(s2d, wr, preferred_element_type=jnp.float32).reshape(bt, L, F)
            acc = acc + (wv_f * za + zr)[:, w:w + lout, :]
        acc = jnp.tanh(acc + conv_b[None])               # (bt, lout, F)
        return jnp.max(acc, axis=1)                      # (bt, F)

    xq = conv_pool(s1, wv1)
    xd = conv_pool(s2, wv2)
    # ext_feats = False -> nothing appended

    # ---- final_layers: Linear -> Tanh -> Dropout(identity) -> Linear -> LogSoftmax ----
    # concat([xq, xd]) @ w1 == xq @ w1[:F] + xd @ w1[F:]   (feature concat removed)
    h = jnp.tanh(jnp.dot(xq, w1[:F, :], preferred_element_type=jnp.float32)
                 + jnp.dot(xd, w1[F:, :], preferred_element_type=jnp.float32)
                 + b1)
    logits = jnp.dot(h, w2, preferred_element_type=jnp.float32) + b2    # (bt, C)
    # lane-dense writeback: pair dimension in lanes.
    out_ref[...] = jnp.swapaxes(_log_softmax_last(logits), 0, 1)        # (C, bt)


def pack_params(conv_w, conv_b, w1, b1, w2, b2):
    """Pack all parameters into a single (rows, 128) f32 buffer (one resident block)."""
    D, F, W, H, C = N_WORD_DIM, N_FILTERS, FILTER_WIDTH, HIDDEN, NUM_CLASSES
    # Re-pack Conv1d weight (F, 2D, W) as (D, W*2F): per tap, first F columns act on the
    # attention-weighted channels, the next F on the raw channels.
    blocks = []
    for w in range(W):
        blocks.append(conv_w[:, :D, w].T)       # (D, F): weighted-channel taps
        blocks.append(conv_w[:, D:, w].T)       # (D, F): raw-channel taps
    w_conv = jnp.concatenate(blocks, axis=1)    # (D, W*2F)

    buf = jnp.zeros((_P_ROWS, _P_COLS), jnp.float32)
    buf = buf.at[_R_WCONV:_R_WCONV + D, :_KCONV].set(w_conv)
    buf = buf.at[_R_W1:_R_W1 + 2 * F, :H].set(w1)
    buf = buf.at[_R_W2:_R_W2 + H, :C].set(w2)
    buf = buf.at[_R_CB, :F].set(conv_b.reshape(-1))
    buf = buf.at[_R_B1, :H].set(b1.reshape(-1))
    buf = buf.at[_R_B2, :C].set(b2.reshape(-1))
    return buf


def _choose_block(Bn, target):
    """Largest pair-block that divides Bn, is lane-dense (multiple of 128) when tiling,
    and leaves >= 2 grid steps (both v7x TensorCores) when the batch allows."""
    if Bn >= 256 and Bn % 128 == 0:
        bt = (min(target, Bn // 2) // 128) * 128
        while bt >= 128:
            if Bn % bt == 0:
                return bt
            bt -= 128
    return Bn   # small / ragged batch: single block


def smcnn_forward(sent1, sent2, params, *, pairs_per_block=512):
    """sent1 / sent2: (B, D, L) float32 (or bf16) in PyTorch Conv1d NCW layout, as-is.

    No wrapper-side transpose/stack: the (D, L) <-> (L, D) swap happens in-kernel on
    the per-block VMEM tile, so each input is read from HBM exactly once.
    """
    conv_w, conv_b, w1, b1, w2, b2 = params
    Bn, D, Ln = sent1.shape
    bt = _choose_block(Bn, pairs_per_block)
    pbuf = pack_params(conv_w, conv_b, w1, b1, w2, b2)

    out_t = pl.pallas_call(
        smcnn_kernel,
        out_shape=jax.ShapeDtypeStruct((NUM_CLASSES, Bn), jnp.float32),
        grid_spec=pltpu.PrefetchScalarGridSpec(
            num_scalar_prefetch=0,
            grid=(Bn // bt,),
            in_specs=[
                pl.BlockSpec((bt, D, Ln), lambda i: (i, 0, 0)),
                pl.BlockSpec((bt, D, Ln), lambda i: (i, 0, 0)),
                pl.BlockSpec((_P_ROWS, _P_COLS), lambda i: (0, 0)),  # resident params
            ],
            out_specs=pl.BlockSpec((NUM_CLASSES, bt), lambda i: (0, i)),
        ),
        compiler_params=pltpu.CompilerParams(
            dimension_semantics=("parallel",)),
    )(sent1, sent2, pbuf)
    # Layout plumbing only: callers that can consume (C, B) directly may skip this.
    return jnp.transpose(out_t)


def reference_forward(sent1, sent2, params):
    """Pure-JAX mirror of the PyTorch forward (correctness check)."""
    conv_w, conv_b, w1, b1, w2, b2 = params
    attn_dot = jnp.einsum('bdi,bdj->bij', sent1, sent2)
    s1n = jnp.linalg.norm(sent1, axis=1)
    s2n = jnp.linalg.norm(sent2, axis=1)
    attn = attn_dot / (s1n[:, :, None] * s2n[:, None, :])
    wv1 = jax.nn.softmax(attn.sum(2), axis=1)
    wv2 = jax.nn.softmax(attn.sum(1), axis=1)
    emb1 = jnp.concatenate([wv1[:, None, :] * sent1, sent1], axis=1)
    emb2 = jnp.concatenate([wv2[:, None, :] * sent2, sent2], axis=1)

    def conv_block(emb):
        lout = emb.shape[2] - FILTER_WIDTH + 1
        acc = sum(jnp.einsum('bct,fc->bft', emb[:, :, w:w + lout], conv_w[:, :, w])
                  for w in range(FILTER_WIDTH))
        acc = jnp.tanh(acc + conv_b[:, :, None])
        return jnp.max(acc, axis=2)

    feat = jnp.concatenate([conv_block(emb1), conv_block(emb2)], axis=1)
    h = jnp.tanh(feat @ w1 + b1)
    logits = h @ w2 + b2
    return jax.nn.log_softmax(logits, axis=1)


if __name__ == "__main__":
    B, L = 2, 8
    key = jax.random.PRNGKey(0)
    ks = jax.random.split(key, 8)
    sent1 = jax.random.normal(ks[0], (B, N_WORD_DIM, L), jnp.float32)
    sent2 = jax.random.normal(ks[1], (B, N_WORD_DIM, L), jnp.float32)

    # deterministic synthetic parameters (linear weights stored (in, out) = torch W.T)
    conv_w = 0.1 * jax.random.normal(ks[2], (N_FILTERS, 2 * N_WORD_DIM, FILTER_WIDTH), jnp.float32)
    conv_b = 0.1 * jax.random.normal(ks[3], (1, N_FILTERS), jnp.float32)
    w1 = 0.1 * jax.random.normal(ks[4], (2 * N_FILTERS, HIDDEN), jnp.float32)
    b1 = 0.1 * jax.random.normal(ks[5], (1, HIDDEN), jnp.float32)
    w2 = 0.1 * jax.random.normal(ks[6], (HIDDEN, NUM_CLASSES), jnp.float32)
    b2 = 0.1 * jax.random.normal(ks[7], (1, NUM_CLASSES), jnp.float32)
    params = (conv_w, conv_b, w1, b1, w2, b2)

    out = smcnn_forward(sent1, sent2, params)
    jax.block_until_ready(out)

    ref = reference_forward(sent1, sent2, params)
    assert out.shape == (B, NUM_CLASSES)
    assert bool(jnp.all(jnp.isfinite(out)))
    assert bool(jnp.allclose(out, ref, atol=5e-2, rtol=5e-2)), (out, ref)
    print("KERNEL_OK")
</pallas_src>

<mosaic_0001>
module attributes {stable_mosaic.version = 11 : i64} {
  func.func @smcnn_kernel(%arg0: i32, %arg1: memref<2x32x8xf32, #tpu.memory_space<vmem>>, %arg2: memref<2x32x8xf32, #tpu.memory_space<vmem>>, %arg3: memref<104x128xf32, #tpu.memory_space<vmem>>, %arg4: memref<2x2xf32, #tpu.memory_space<vmem>>) attributes {dimension_semantics = [#tpu.dimension_semantics<parallel>], iteration_bounds = array<i64: 1>, scalar_prefetch = 0 : i64, scratch_operands = 0 : i64, tpu.core_type = #tpu.core_type<tc>, window_params = [{transform_indices = @transform_0, window_bounds = array<i64: 2, 32, 8>}, {transform_indices = @transform_1, window_bounds = array<i64: 2, 32, 8>}, {pipeline_mode = #tpu.pipeline_mode<synchronous>, transform_indices = @transform_2, window_bounds = array<i64: 104, 128>}, {transform_indices = @transform_3, window_bounds = array<i64: 2, 2>}]} {
    %c0 = arith.constant 0 : index
    %c0_0 = arith.constant 0 : index
    %c0_1 = arith.constant 0 : index
    %0 = vector.load %arg1[%c0, %c0_0, %c0_1] : memref<2x32x8xf32, #tpu.memory_space<vmem>>, vector<2x32x8xf32>
    %1 = tpu.transpose %0, [0, 2, 1] : vector<2x32x8xf32> -> vector<2x8x32xf32>
    %c0_2 = arith.constant 0 : index
    %c0_3 = arith.constant 0 : index
    %c0_4 = arith.constant 0 : index
    %2 = vector.load %arg2[%c0_2, %c0_3, %c0_4] : memref<2x32x8xf32, #tpu.memory_space<vmem>>, vector<2x32x8xf32>
    %3 = tpu.transpose %2, [0, 2, 1] : vector<2x32x8xf32> -> vector<2x8x32xf32>
    %c0_5 = arith.constant 0 : index
    %c0_6 = arith.constant 0 : index
    %4 = vector.load %arg3[%c0_5, %c0_6] : memref<104x128xf32, #tpu.memory_space<vmem>>, vector<32x96xf32>
    %c32 = arith.constant 32 : index
    %c0_7 = arith.constant 0 : index
    %5 = vector.load %arg3[%c32, %c0_7] : memref<104x128xf32, #tpu.memory_space<vmem>>, vector<32x32xf32>
    %c64 = arith.constant 64 : index
    %c0_8 = arith.constant 0 : index
    %6 = vector.load %arg3[%c64, %c0_8] : memref<104x128xf32, #tpu.memory_space<vmem>>, vector<32x2xf32>
    %c96 = arith.constant 96 : index
    %c0_9 = arith.constant 0 : index
    %7 = vector.load %arg3[%c96, %c0_9] : memref<104x128xf32, #tpu.memory_space<vmem>>, vector<1x16xf32>
    %c97 = arith.constant 97 : index
    %c0_10 = arith.constant 0 : index
    %8 = vector.load %arg3[%c97, %c0_10] : memref<104x128xf32, #tpu.memory_space<vmem>>, vector<1x32xf32>
    %c98 = arith.constant 98 : index
    %c0_11 = arith.constant 0 : index
    %9 = vector.load %arg3[%c98, %c0_11] : memref<104x128xf32, #tpu.memory_space<vmem>>, vector<1x2xf32>
    %10 = arith.mulf %1, %1 : vector<2x8x32xf32>
    %cst = arith.constant dense<0.000000e+00> : vector<2x8xf32>
    %11 = vector.multi_reduction <add>, %10, %cst [2] : vector<2x8x32xf32> to vector<2x8xf32>
    %12 = vector.shape_cast %11 : vector<2x8xf32> to vector<2x8x1xf32>
    %13 = math.rsqrt %12 : vector<2x8x1xf32>
    %14 = arith.mulf %3, %3 : vector<2x8x32xf32>
    %cst_12 = arith.constant dense<0.000000e+00> : vector<2x8xf32>
    %15 = vector.multi_reduction <add>, %14, %cst_12 [2] : vector<2x8x32xf32> to vector<2x8xf32>
    %16 = vector.shape_cast %15 : vector<2x8xf32> to vector<2x8x1xf32>
    %17 = math.rsqrt %16 : vector<2x8x1xf32>
    %18 = vector.broadcast %13 : vector<2x8x1xf32> to vector<2x8x32xf32>
    %19 = arith.mulf %18, %1 : vector<2x8x32xf32>
    %cst_13 = arith.constant dense<0.000000e+00> : vector<2x32xf32>
    %20 = vector.multi_reduction <add>, %19, %cst_13 [1] : vector<2x8x32xf32> to vector<2x32xf32>
    %21 = vector.shape_cast %20 : vector<2x32xf32> to vector<2x1x32xf32>
    %22 = vector.broadcast %17 : vector<2x8x1xf32> to vector<2x8x32xf32>
    %23 = arith.mulf %22, %3 : vector<2x8x32xf32>
    %cst_14 = arith.constant dense<0.000000e+00> : vector<2x32xf32>
    %24 = vector.multi_reduction <add>, %23, %cst_14 [1] : vector<2x8x32xf32> to vector<2x32xf32>
    %25 = vector.shape_cast %24 : vector<2x32xf32> to vector<2x1x32xf32>
    %26 = vector.broadcast %25 : vector<2x1x32xf32> to vector<2x8x32xf32>
    %27 = arith.mulf %1, %26 : vector<2x8x32xf32>
    %cst_15 = arith.constant dense<0.000000e+00> : vector<2x8xf32>
    %28 = vector.multi_reduction <add>, %27, %cst_15 [2] : vector<2x8x32xf32> to vector<2x8xf32>
    %29 = vector.shape_cast %28 : vector<2x8xf32> to vector<2x8x1xf32>
    %30 = arith.mulf %13, %29 : vector<2x8x1xf32>
    %31 = vector.broadcast %21 : vector<2x1x32xf32> to vector<2x8x32xf32>
    %32 = arith.mulf %3, %31 : vector<2x8x32xf32>
    %cst_16 = arith.constant dense<0.000000e+00> : vector<2x8xf32>
    %33 = vector.multi_reduction <add>, %32, %cst_16 [2] : vector<2x8x32xf32> to vector<2x8xf32>
    %34 = vector.shape_cast %33 : vector<2x8xf32> to vector<2x8x1xf32>
    %35 = arith.mulf %17, %34 : vector<2x8x1xf32>
    %cst_17 = arith.constant dense<0xFF800000> : vector<2x1xf32>
    %36 = vector.multi_reduction <maximumf>, %30, %cst_17 [1] : vector<2x8x1xf32> to vector<2x1xf32>
    %37 = vector.shape_cast %36 : vector<2x1xf32> to vector<2x1x1xf32>
    %38 = vector.broadcast %37 : vector<2x1x1xf32> to vector<2x8x1xf32>
    %39 = arith.subf %30, %38 : vector<2x8x1xf32>
    %40 = math.exp %39 : vector<2x8x1xf32>
    %cst_18 = arith.constant dense<0.000000e+00> : vector<2x1xf32>
    %41 = vector.multi_reduction <add>, %40, %cst_18 [1] : vector<2x8x1xf32> to vector<2x1xf32>
    %42 = vector.shape_cast %41 : vector<2x1xf32> to vector<2x1x1xf32>
    %43 = tpu.reciprocal %42 {approx = true} : vector<2x1x1xf32> -> vector<2x1x1xf32>
    %44 = vector.broadcast %43 : vector<2x1x1xf32> to vector<2x8x1xf32>
    %45 = arith.mulf %40, %44 : vector<2x8x1xf32>
    %cst_19 = arith.constant dense<0xFF800000> : vector<2x1xf32>
    %46 = vector.multi_reduction <maximumf>, %35, %cst_19 [1] : vector<2x8x1xf32> to vector<2x1xf32>
    %47 = vector.shape_cast %46 : vector<2x1xf32> to vector<2x1x1xf32>
    %48 = vector.broadcast %47 : vector<2x1x1xf32> to vector<2x8x1xf32>
    %49 = arith.subf %35, %48 : vector<2x8x1xf32>
    %50 = math.exp %49 : vector<2x8x1xf32>
    %cst_20 = arith.constant dense<0.000000e+00> : vector<2x1xf32>
    %51 = vector.multi_reduction <add>, %50, %cst_20 [1] : vector<2x8x1xf32> to vector<2x1xf32>
    %52 = vector.shape_cast %51 : vector<2x1xf32> to vector<2x1x1xf32>
    %53 = tpu.reciprocal %52 {approx = true} : vector<2x1x1xf32> -> vector<2x1x1xf32>
    %54 = vector.broadcast %53 : vector<2x1x1xf32> to vector<2x8x1xf32>
    %55 = arith.mulf %50, %54 : vector<2x8x1xf32>
    %56 = vector.shape_cast %1 : vector<2x8x32xf32> to vector<16x32xf32>
    %57 = vector.shape_cast %45 : vector<2x8x1xf32> to vector<2x8x1xf32>
    %58 = vector.broadcast %57 : vector<2x8x1xf32> to vector<2x8x16xf32>
    %cst_21 = arith.constant 0.000000e+00 : f32
    %59 = vector.broadcast %cst_21 : f32 to vector<2x6x16xf32>
    %60 = vector.extract_strided_slice %4 {offsets = [0, 0], sizes = [32, 16], strides = [1, 1]} : vector<32x96xf32> to vector<32x16xf32>
    %61 = vector.extract_strided_slice %4 {offsets = [0, 16], sizes = [32, 16], strides = [1, 1]} : vector<32x96xf32> to vector<32x16xf32>
    %cst_22 = arith.constant dense<0.000000e+00> : vector<16x16xf32>
    %62 = tpu.matmul %56, %60, %cst_22 {dimension_numbers = #tpu.dot_dimension_numbers<[1], [0], [0], [1], [0, 0, 1, 1], [], []>} : vector<16x32xf32>, vector<32x16xf32>, vector<16x16xf32> -> vector<16x16xf32>
    %63 = vector.shape_cast %62 : vector<16x16xf32> to vector<2x8x16xf32>
    %cst_23 = arith.constant dense<0.000000e+00> : vector<16x16xf32>
    %64 = tpu.matmul %56, %61, %cst_23 {dimension_numbers = #tpu.dot_dimension_numbers<[1], [0], [0], [1], [0, 0, 1, 1], [], []>} : vector<16x32xf32>, vector<32x16xf32>, vector<16x16xf32> -> vector<16x16xf32>
    %65 = vector.shape_cast %64 : vector<16x16xf32> to vector<2x8x16xf32>
    %66 = arith.mulf %58, %63 : vector<2x8x16xf32>
    %67 = arith.addf %66, %65 : vector<2x8x16xf32>
    %68 = vector.extract_strided_slice %67 {offsets = [0, 0, 0], sizes = [2, 6, 16], strides = [1, 1, 1]} : vector<2x8x16xf32> to vector<2x6x16xf32>
    %69 = arith.addf %59, %68 : vector<2x6x16xf32>
    %70 = vector.extract_strided_slice %4 {offsets = [0, 32], sizes = [32, 16], strides = [1, 1]} : vector<32x96xf32> to vector<32x16xf32>
    %71 = vector.extract_strided_slice %4 {offsets = [0, 48], sizes = [32, 16], strides = [1, 1]} : vector<32x96xf32> to vector<32x16xf32>
    %cst_24 = arith.constant dense<0.000000e+00> : vector<16x16xf32>
    %72 = tpu.matmul %56, %70, %cst_24 {dimension_numbers = #tpu.dot_dimension_numbers<[1], [0], [0], [1], [0, 0, 1, 1], [], []>} : vector<16x32xf32>, vector<32x16xf32>, vector<16x16xf32> -> vector<16x16xf32>
    %73 = vector.shape_cast %72 : vector<16x16xf32> to vector<2x8x16xf32>
    %cst_25 = arith.constant dense<0.000000e+00> : vector<16x16xf32>
    %74 = tpu.matmul %56, %71, %cst_25 {dimension_numbers = #tpu.dot_dimension_numbers<[1], [0], [0], [1], [0, 0, 1, 1], [], []>} : vector<16x32xf32>, vector<32x16xf32>, vector<16x16xf32> -> vector<16x16xf32>
    %75 = vector.shape_cast %74 : vector<16x16xf32> to vector<2x8x16xf32>
    %76 = arith.mulf %58, %73 : vector<2x8x16xf32>
    %77 = arith.addf %76, %75 : vector<2x8x16xf32>
    %78 = vector.extract_strided_slice %77 {offsets = [0, 1, 0], sizes = [2, 6, 16], strides = [1, 1, 1]} : vector<2x8x16xf32> to vector<2x6x16xf32>
    %79 = arith.addf %69, %78 : vector<2x6x16xf32>
    %80 = vector.extract_strided_slice %4 {offsets = [0, 64], sizes = [32, 16], strides = [1, 1]} : vector<32x96xf32> to vector<32x16xf32>
    %81 = vector.extract_strided_slice %4 {offsets = [0, 80], sizes = [32, 16], strides = [1, 1]} : vector<32x96xf32> to vector<32x16xf32>
    %cst_26 = arith.constant dense<0.000000e+00> : vector<16x16xf32>
    %82 = tpu.matmul %56, %80, %cst_26 {dimension_numbers = #tpu.dot_dimension_numbers<[1], [0], [0], [1], [0, 0, 1, 1], [], []>} : vector<16x32xf32>, vector<32x16xf32>, vector<16x16xf32> -> vector<16x16xf32>
    %83 = vector.shape_cast %82 : vector<16x16xf32> to vector<2x8x16xf32>
    %cst_27 = arith.constant dense<0.000000e+00> : vector<16x16xf32>
    %84 = tpu.matmul %56, %81, %cst_27 {dimension_numbers = #tpu.dot_dimension_numbers<[1], [0], [0], [1], [0, 0, 1, 1], [], []>} : vector<16x32xf32>, vector<32x16xf32>, vector<16x16xf32> -> vector<16x16xf32>
    %85 = vector.shape_cast %84 : vector<16x16xf32> to vector<2x8x16xf32>
    %86 = arith.mulf %58, %83 : vector<2x8x16xf32>
    %87 = arith.addf %86, %85 : vector<2x8x16xf32>
    %88 = vector.extract_strided_slice %87 {offsets = [0, 2, 0], sizes = [2, 6, 16], strides = [1, 1, 1]} : vector<2x8x16xf32> to vector<2x6x16xf32>
    %89 = arith.addf %79, %88 : vector<2x6x16xf32>
    %90 = vector.shape_cast %7 : vector<1x16xf32> to vector<1x1x16xf32>
    %91 = vector.broadcast %90 : vector<1x1x16xf32> to vector<2x6x16xf32>
    %92 = arith.addf %89, %91 : vector<2x6x16xf32>
    %93 = math.tanh %92 : vector<2x6x16xf32>
    %cst_28 = arith.constant dense<0xFF800000> : vector<2x16xf32>
    %94 = vector.multi_reduction <maximumf>, %93, %cst_28 [1] : vector<2x6x16xf32> to vector<2x16xf32>
    %95 = vector.shape_cast %3 : vector<2x8x32xf32> to vector<16x32xf32>
    %96 = vector.shape_cast %55 : vector<2x8x1xf32> to vector<2x8x1xf32>
    %97 = vector.broadcast %96 : vector<2x8x1xf32> to vector<2x8x16xf32>
    %cst_29 = arith.constant 0.000000e+00 : f32
    %98 = vector.broadcast %cst_29 : f32 to vector<2x6x16xf32>
    %99 = vector.extract_strided_slice %4 {offsets = [0, 0], sizes = [32, 16], strides = [1, 1]} : vector<32x96xf32> to vector<32x16xf32>
    %100 = vector.extract_strided_slice %4 {offsets = [0, 16], sizes = [32, 16], strides = [1, 1]} : vector<32x96xf32> to vector<32x16xf32>
    %cst_30 = arith.constant dense<0.000000e+00> : vector<16x16xf32>
    %101 = tpu.matmul %95, %99, %cst_30 {dimension_numbers = #tpu.dot_dimension_numbers<[1], [0], [0], [1], [0, 0, 1, 1], [], []>} : vector<16x32xf32>, vector<32x16xf32>, vector<16x16xf32> -> vector<16x16xf32>
    %102 = vector.shape_cast %101 : vector<16x16xf32> to vector<2x8x16xf32>
    %cst_31 = arith.constant dense<0.000000e+00> : vector<16x16xf32>
    %103 = tpu.matmul %95, %100, %cst_31 {dimension_numbers = #tpu.dot_dimension_numbers<[1], [0], [0], [1], [0, 0, 1, 1], [], []>} : vector<16x32xf32>, vector<32x16xf32>, vector<16x16xf32> -> vector<16x16xf32>
    %104 = vector.shape_cast %103 : vector<16x16xf32> to vector<2x8x16xf32>
    %105 = arith.mulf %97, %102 : vector<2x8x16xf32>
    %106 = arith.addf %105, %104 : vector<2x8x16xf32>
    %107 = vector.extract_strided_slice %106 {offsets = [0, 0, 0], sizes = [2, 6, 16], strides = [1, 1, 1]} : vector<2x8x16xf32> to vector<2x6x16xf32>
    %108 = arith.addf %98, %107 : vector<2x6x16xf32>
    %109 = vector.extract_strided_slice %4 {offsets = [0, 32], sizes = [32, 16], strides = [1, 1]} : vector<32x96xf32> to vector<32x16xf32>
    %110 = vector.extract_strided_slice %4 {offsets = [0, 48], sizes = [32, 16], strides = [1, 1]} : vector<32x96xf32> to vector<32x16xf32>
    %cst_32 = arith.constant dense<0.000000e+00> : vector<16x16xf32>
    %111 = tpu.matmul %95, %109, %cst_32 {dimension_numbers = #tpu.dot_dimension_numbers<[1], [0], [0], [1], [0, 0, 1, 1], [], []>} : vector<16x32xf32>, vector<32x16xf32>, vector<16x16xf32> -> vector<16x16xf32>
    %112 = vector.shape_cast %111 : vector<16x16xf32> to vector<2x8x16xf32>
    %cst_33 = arith.constant dense<0.000000e+00> : vector<16x16xf32>
    %113 = tpu.matmul %95, %110, %cst_33 {dimension_numbers = #tpu.dot_dimension_numbers<[1], [0], [0], [1], [0, 0, 1, 1], [], []>} : vector<16x32xf32>, vector<32x16xf32>, vector<16x16xf32> -> vector<16x16xf32>
    %114 = vector.shape_cast %113 : vector<16x16xf32> to vector<2x8x16xf32>
    %115 = arith.mulf %97, %112 : vector<2x8x16xf32>
    %116 = arith.addf %115, %114 : vector<2x8x16xf32>
    %117 = vector.extract_strided_slice %116 {offsets = [0, 1, 0], sizes = [2, 6, 16], strides = [1, 1, 1]} : vector<2x8x16xf32> to vector<2x6x16xf32>
    %118 = arith.addf %108, %117 : vector<2x6x16xf32>
    %119 = vector.extract_strided_slice %4 {offsets = [0, 64], sizes = [32, 16], strides = [1, 1]} : vector<32x96xf32> to vector<32x16xf32>
    %120 = vector.extract_strided_slice %4 {offsets = [0, 80], sizes = [32, 16], strides = [1, 1]} : vector<32x96xf32> to vector<32x16xf32>
    %cst_34 = arith.constant dense<0.000000e+00> : vector<16x16xf32>
    %121 = tpu.matmul %95, %119, %cst_34 {dimension_numbers = #tpu.dot_dimension_numbers<[1], [0], [0], [1], [0, 0, 1, 1], [], []>} : vector<16x32xf32>, vector<32x16xf32>, vector<16x16xf32> -> vector<16x16xf32>
    %122 = vector.shape_cast %121 : vector<16x16xf32> to vector<2x8x16xf32>
    %cst_35 = arith.constant dense<0.000000e+00> : vector<16x16xf32>
    %123 = tpu.matmul %95, %120, %cst_35 {dimension_numbers = #tpu.dot_dimension_numbers<[1], [0], [0], [1], [0, 0, 1, 1], [], []>} : vector<16x32xf32>, vector<32x16xf32>, vector<16x16xf32> -> vector<16x16xf32>
    %124 = vector.shape_cast %123 : vector<16x16xf32> to vector<2x8x16xf32>
    %125 = arith.mulf %97, %122 : vector<2x8x16xf32>
    %126 = arith.addf %125, %124 : vector<2x8x16xf32>
    %127 = vector.extract_strided_slice %126 {offsets = [0, 2, 0], sizes = [2, 6, 16], strides = [1, 1, 1]} : vector<2x8x16xf32> to vector<2x6x16xf32>
    %128 = arith.addf %118, %127 : vector<2x6x16xf32>
    %129 = vector.shape_cast %7 : vector<1x16xf32> to vector<1x1x16xf32>
    %130 = vector.broadcast %129 : vector<1x1x16xf32> to vector<2x6x16xf32>
    %131 = arith.addf %128, %130 : vector<2x6x16xf32>
    %132 = math.tanh %131 : vector<2x6x16xf32>
    %cst_36 = arith.constant dense<0xFF800000> : vector<2x16xf32>
    %133 = vector.multi_reduction <maximumf>, %132, %cst_36 [1] : vector<2x6x16xf32> to vector<2x16xf32>
    %134 = vector.extract_strided_slice %5 {offsets = [0, 0], sizes = [16, 32], strides = [1, 1]} : vector<32x32xf32> to vector<16x32xf32>
    %cst_37 = arith.constant dense<0.000000e+00> : vector<2x32xf32>
    %135 = tpu.matmul %94, %134, %cst_37 {dimension_numbers = #tpu.dot_dimension_numbers<[1], [0], [0], [1], [0, 0, 1, 1], [], []>} : vector<2x16xf32>, vector<16x32xf32>, vector<2x32xf32> -> vector<2x32xf32>
    %136 = vector.extract_strided_slice %5 {offsets = [16, 0], sizes = [16, 32], strides = [1, 1]} : vector<32x32xf32> to vector<16x32xf32>
    %cst_38 = arith.constant dense<0.000000e+00> : vector<2x32xf32>
    %137 = tpu.matmul %133, %136, %cst_38 {dimension_numbers = #tpu.dot_dimension_numbers<[1], [0], [0], [1], [0, 0, 1, 1], [], []>} : vector<2x16xf32>, vector<16x32xf32>, vector<2x32xf32> -> vector<2x32xf32>
    %138 = arith.addf %135, %137 : vector<2x32xf32>
    %139 = vector.broadcast %8 : vector<1x32xf32> to vector<2x32xf32>
    %140 = arith.addf %138, %139 : vector<2x32xf32>
    %141 = math.tanh %140 : vector<2x32xf32>
    %cst_39 = arith.constant dense<0.000000e+00> : vector<2x2xf32>
    %142 = tpu.matmul %141, %6, %cst_39 {dimension_numbers = #tpu.dot_dimension_numbers<[1], [0], [0], [1], [0, 0, 1, 1], [], []>} : vector<2x32xf32>, vector<32x2xf32>, vector<2x2xf32> -> vector<2x2xf32>
    %143 = vector.broadcast %9 : vector<1x2xf32> to vector<2x2xf32>
    %144 = arith.addf %142, %143 : vector<2x2xf32>
    %cst_40 = arith.constant dense<0xFF800000> : vector<2xf32>
    %145 = vector.multi_reduction <maximumf>, %144, %cst_40 [1] : vector<2x2xf32> to vector<2xf32>
    %146 = vector.shape_cast %145 : vector<2xf32> to vector<2x1xf32>
    %147 = vector.broadcast %146 : vector<2x1xf32> to vector<2x2xf32>
    %148 = arith.subf %144, %147 : vector<2x2xf32>
    %149 = math.exp %148 : vector<2x2xf32>
    %cst_41 = arith.constant dense<0.000000e+00> : vector<2xf32>
    %150 = vector.multi_reduction <add>, %149, %cst_41 [1] : vector<2x2xf32> to vector<2xf32>
    %151 = vector.shape_cast %150 : vector<2xf32> to vector<2x1xf32>
    %152 = math.log %151 : vector<2x1xf32>
    %153 = vector.broadcast %152 : vector<2x1xf32> to vector<2x2xf32>
    %154 = arith.subf %148, %153 : vector<2x2xf32>
    %155 = tpu.transpose %154, [1, 0] : vector<2x2xf32> -> vector<2x2xf32>
    %c0_42 = arith.constant 0 : index
    %c0_43 = arith.constant 0 : index
    %156 = vector.load %arg4[%c0_42, %c0_43] : memref<2x2xf32, #tpu.memory_space<vmem>>, vector<2x2xf32>
    tpu.vector_store %arg4[%c0_42, %c0_43], %155 {strides = array<i32>} : memref<2x2xf32, #tpu.memory_space<vmem>>, vector<2x2xf32>,
    return
  }
  func.func @transform_0(%arg0: i32) -> (i32, i32, i32) {
    %c0_i32 = arith.constant 0 : i32
    %c0_i32_0 = arith.constant 0 : i32
    %c0_i32_1 = arith.constant 0 : i32
    return %arg0, %c0_i32, %c0_i32_0 : i32, i32, i32
  }
  func.func @transform_1(%arg0: i32) -> (i32, i32, i32) {
    %c0_i32 = arith.constant 0 : i32
    %c0_i32_0 = arith.constant 0 : i32
    %c0_i32_1 = arith.constant 0 : i32
    return %arg0, %c0_i32, %c0_i32_0 : i32, i32, i32
  }
  func.func @transform_2(%arg0: i32) -> (i32, i32) {
    %c0_i32 = arith.constant 0 : i32
    %c0_i32_0 = arith.constant 0 : i32
    %c0_i32_1 = arith.constant 0 : i32
    return %c0_i32, %c0_i32_0 : i32, i32
  }
  func.func @transform_3(%arg0: i32) -> (i32, i32) {
    %c0_i32 = arith.constant 0 : i32
    %c0_i32_0 = arith.constant 0 : i32
    return %c0_i32, %arg0 : i32, i32
  }
}

</mosaic_0001>

<bundles_post_ra>
// kernel: tpu_custom_call.1
= control target key start
LH: loop header
LB: loop body
LE: loop exit
PB: predicated region body
PF: predicated region fallthrough
CT: control target
= control target key end

     0   :  { %s2025_s16 = smov 112   ;;  %s2473_s0 = inlined_call_operand.vmem [shape: f32[2,32,8], index: 0, kind: input, shape index: {}]   ;;  %s2474_s1 = inlined_call_operand.vmem [shape: f32[2,32,8], index: 1, kind: input, shape index: {}]   ;;  %s2475_s2 = inlined_call_operand.vmem [shape: f32[104,128], index: 2, kind: input, shape index: {}]   ;;  %s2476_s3 = inlined_call_operand.hbm [shape: f32[2,2], index: 3, kind: output, shape index: {}]  }
   0x1   :  { %v2056_v0 = vld [vmem:[%s2475_s2 + $0x18] sm:$0xff]  ;;  %v2061_v1 = vld [vmem:[%s2475_s2 + $0x8] sm:$0xff]  ;;  %v2068_v2 = vld [vmem:[%s2475_s2 + $0x10] sm:$0xff] }
   0x2   :  { %406 = vrot.lane.b32.xlu0 %v2056_v0, %s2025_s16  ;;  %402 = vrot.lane.b32.xlu1 %v2061_v1, %s2025_s16  ;;  %v2073_v3 = vld [vmem:[%s2475_s2] sm:$0xff] }
   0x3   :  { %1800 = vmatprep.subr.mxu0 %v2056_v0 }
   0x4   :  { %1801 = vmatpush3.msra.mxu0 %v2056_v0 }
   0x5   :  { %1802 = vmatprep.subr.mxu0 %v2068_v2 }
   0x6   :  { %404 = vrot.lane.b32.xlu0 %v2068_v2, %s2025_s16  ;;  %400 = vrot.lane.b32.xlu1 %v2073_v3, %s2025_s16 }
   0x7   :  { %1803 = vmatpush3.msra.mxu0 %v2068_v2 }
   0x8   :  { %1804 = vmatprep.subr.mxu0 %v2061_v1 }
   0x9   :  { %8 = vsyncpa [#allocation3], 0  ;;  %1805 = vmatpush3.msra.mxu0 %v2061_v1  ;;  %s2026_s21 = smov 96   ;;  %s2027_s22 = smov 80   ;;  %v15_v4 = vld [vmem:[%s2473_s0] sm:$0xff]  ;;  %v16_v5 = vld [vmem:[%s2473_s0 + $0x8] sm:$0xff] }
   0xa   :  { %499 = vrot.lane.b32.xlu0 %v2056_v0, %s2026_s21  ;;  %497 = vrot.lane.b32.xlu1 %v2068_v2, %s2026_s21  ;;  %s2028_s23 = smov 64   ;;  %s2029_s24 = smov 48   ;;  %v17_v6 = vld [vmem:[%s2473_s0 + $0x10] sm:$0xff]  ;;  %v19_v7 = vld [vmem:[%s2473_s0 + $0x20] sm:$0xff]  ;;  %vm176_vm0 = vcmask 261120   ;;  %vm2031_vm1 = vmmov 0  }
   0xb   :  { %1806 = vmatprep.subr.mxu0 %v2073_v3  ;;  %v18_v8 = vld [vmem:[%s2473_s0 + $0x18] sm:$0xff]  ;;  %v20_v9 = vld [vmem:[%s2473_s0 + $0x28] sm:$0xff]  ;;  %v87_v10 = vld [vmem:[%s2474_s1] sm:$0xff]  ;;  %vm873_vm2 = vcmask 128000   ;;  %vm1394_vm3 = vcmask 1041409   ;;  %vm1396_vm4 = vcmask 130048  }
   0xc   :  { %1807 = vmatpush3.msra.mxu0 %v2073_v3  ;;  %v21_v11 = vld [vmem:[%s2473_s0 + $0x30] sm:$0xff]  ;;  %v88_v12 = vld [vmem:[%s2474_s1 + $0x8] sm:$0xff]  ;;  %v22_v13 = vld [vmem:[%s2473_s0 + $0x38] sm:$0xff]  ;;  %vm1627_vm5 = vcmask 9216  }
   0xd   :  { %v89_v14 = vld [vmem:[%s2474_s1 + $0x10] sm:$0xff]  ;;  %v91_v15 = vld [vmem:[%s2474_s1 + $0x20] sm:$0xff]  ;;  %v90_v16 = vld [vmem:[%s2474_s1 + $0x18] sm:$0xff] }
   0xe   :  { %586 = vrot.lane.b32.xlu0 %v2056_v0, %s2027_s22  ;;  %495 = vrot.lane.b32.xlu1 %v2061_v1, %s2026_s21  ;;  %v92_v17 = vld [vmem:[%s2474_s1 + $0x28] sm:$0xff]  ;;  %v93_v18 = vld [vmem:[%s2474_s1 + $0x30] sm:$0xff] }
   0xf   :  { %v94_v19 = vld [vmem:[%s2474_s1 + $0x38] sm:$0xff] }
  0x12   :  { %584 = vrot.lane.b32.xlu0 %v2068_v2, %s2027_s22  ;;  %493 = vrot.lane.b32.xlu1 %v2073_v3, %s2026_s21 }
  0x16   :  { %582 = vrot.lane.b32.xlu0 %v2061_v1, %s2027_s22  ;;  %580 = vrot.lane.b32.xlu1 %v2073_v3, %s2027_s22 }
  0x1a   :  { %685 = vrot.lane.b32.xlu0 %v2056_v0, %s2028_s23  ;;  %683 = vrot.lane.b32.xlu1 %v2068_v2, %s2028_s23 }
  0x1e   :  { %772 = vrot.lane.b32.xlu0 %v2056_v0, %s2029_s24  ;;  %681 = vrot.lane.b32.xlu1 %v2061_v1, %s2028_s23 }
  0x22   :  { %770 = vrot.lane.b32.xlu0 %v2068_v2, %s2029_s24  ;;  %679 = vrot.lane.b32.xlu1 %v2073_v3, %s2028_s23 }
  0x26   :  { %768 = vrot.lane.b32.xlu0 %v2061_v1, %s2029_s24  ;;  %766 = vrot.lane.b32.xlu1 %v2073_v3, %s2029_s24 }
  0x44   :  { %23 = vxpose.xlu0.b32.start [1/4] (short) (narrow) %v15_v4, 8 }
  0x48   :  { %24 = vxpose.xlu0.b32.cont [2/4] (short) (narrow) %v16_v5, 8 }
  0x4c   :  { %25 = vxpose.xlu0.b32.cont [3/4] (short) (narrow) %v17_v6, 8 }
  0x4f   :  { %55 = vxpose.xlu1.b32.start [1/4] (short) (narrow) %v19_v7, 8 }
  0x50   :  { %26 = vxpose.xlu0.b32.end [4/4] (short) (narrow) %v18_v8, 8 }
  0x53   :  { %56 = vxpose.xlu1.b32.cont [2/4] (short) (narrow) %v20_v9, 8 }
  0x54   :  { %95 = vxpose.xlu0.b32.start [1/4] (short) (narrow) %v87_v10, 8 }
  0x57   :  { %57 = vxpose.xlu1.b32.cont [3/4] (short) (narrow) %v21_v11, 8 }
  0x58   :  { %96 = vxpose.xlu0.b32.cont [2/4] (short) (narrow) %v88_v12, 8 }
  0x5b   :  { %58 = vxpose.xlu1.b32.end [4/4] (short) (narrow) %v22_v13, 8 }
  0x5c   :  { %97 = vxpose.xlu0.b32.cont [3/4] (short) (narrow) %v89_v14, 8 }
  0x5f   :  { %127 = vxpose.xlu1.b32.start [1/4] (short) (narrow) %v91_v15, 8 }
  0x60   :  { %98 = vxpose.xlu0.b32.end [4/4] (short) (narrow) %v90_v16, 8 }
  0x63   :  { %128 = vxpose.xlu1.b32.cont [2/4] (short) (narrow) %v92_v17, 8 }
  0x67   :  { %129 = vxpose.xlu1.b32.cont [3/4] (short) (narrow) %v93_v18, 8 }
  0x6b   :  { %130 = vxpose.xlu1.b32.end [4/4] (short) (narrow) %v94_v19, 8 }
  0x74   :  { %v2149_v20 = vpop.permute.xlu0 %406  ;;  %v2152_v21 = vpop.permute.xlu1 %402 }
  0x75   :  { %1811 = vmatprep.subr.mxu1 %v2149_v20 }
  0x76   :  { %1812 = vmatpush3.msra.mxu1 %v2149_v20 }
  0x78   :  { %v2155_v22 = vpop.permute.xlu0 %404  ;;  %v2160_v23 = vpop.permute.xlu1 %400 }
  0x79   :  { %1813 = vmatprep.subr.mxu1 %v2155_v22 }
  0x7a   :  { %1814 = vmatpush3.msra.mxu1 %v2155_v22 }
  0x7b   :  { %1815 = vmatprep.subr.mxu1 %v2152_v21 }
  0x7c   :  { %1816 = vmatpush3.msra.mxu1 %v2152_v21  ;;  %v2163_v24 = vpop.permute.xlu0 %499  ;;  %v2171_v26 = vpop.permute.xlu1 %497 }
  0x7d   :  { %1817 = vmatprep.subr.mxu1 %v2160_v23  ;;  %1822 = vmatprep.subr.mxu0 %v2163_v24 }
  0x7e   :  { %1818 = vmatpush3.msra.mxu1 %v2160_v23 }
  0x80   :  { %v2168_v25 = vpop.permute.xlu0 %586  ;;  %v2175_v28 = vpop.permute.xlu1 %495 }
  0x81   :  { %1833 = vmatprep.subr.mxu1 %v2168_v25 }
  0x84   :  { %v2173_v27 = vpop.permute.xlu0 %584  ;;  %v2179_v30 = vpop.permute.xlu1 %493 }
  0x88   :  { %v2177_v29 = vpop.permute.xlu0 %582  ;;  %v2183_v32 = vpop.permute.xlu1 %580 }
  0x8c   :  { %v2181_v31 = vpop.permute.xlu0 %685  ;;  %v2187_v34 = vpop.permute.xlu1 %683 }
  0x90   :  { %v2185_v33 = vpop.permute.xlu0 %772  ;;  %v2191_v36 = vpop.permute.xlu1 %681 }
  0x94   :  { %v2189_v35 = vpop.permute.xlu0 %770  ;;  %v2197_v39 = vpop.permute.xlu1 %679 }
  0x98   :  { %v2193_v37 = vpop.permute.xlu0 %768  ;;  %v2206_v42 = vpop.permute.xlu1 %766 }
  0xc0   :  { %v2195_v38 = vpop.trf.xlu0 }
  0xc1   :  { %v174_v40 = vmul.f32 %v2195_v38, %v2195_v38  ;;  %1808 = vmatprep.mubr.msk.f32.mxu0 %vm176_vm0, %v2195_v38  ;;  %1819 = vmatprep.mubr.msk.f32.mxu1 %vm176_vm0, %v2195_v38 }
  0xc3   :  { %v177_v41 = vsel %vm176_vm0, %v174_v40, 0.0 }
  0xc4   :  { %178 = vadd.xlane.f32.xlu0 %v177_v41 }
  0xcb   :  { %v2208_v43 = vpop.trf.xlu1 }
  0xcc   :  { %1809 = vmatmul.mubr.msk.f32.vlgmr.msra.gmra.mxu0 %vm176_vm0, %v2208_v43  ;;  %1820 = vmatmul.mubr.msk.f32.vlgmr.msra.gmra.mxu1 %vm176_vm0, %v2208_v43  ;;  %v175_v44 = vmul.f32 %v2208_v43, %v2208_v43 }
  0xcd   :  { %1823 = vmatpush3.msra.mxu0 %v2163_v24  ;;  %1834 = vmatpush3.msra.mxu1 %v2168_v25 }
  0xce   :  { %1824 = vmatprep.subr.mxu0 %v2171_v26  ;;  %1835 = vmatprep.subr.mxu1 %v2173_v27  ;;  %v180_v45 = vsel %vm176_vm0, %v175_v44, 0.0 }
  0xcf   :  { %1825 = vmatpush3.msra.mxu0 %v2171_v26  ;;  %1836 = vmatpush3.msra.mxu1 %v2173_v27 }
  0xd0   :  { %181 = vadd.xlane.f32.xlu1 %v180_v45  ;;  %1826 = vmatprep.subr.mxu0 %v2175_v28  ;;  %v2224_v46 = vpop.trf.xlu0 }
  0xd1   :  { %1837 = vmatprep.subr.mxu1 %v2177_v29  ;;  %1827 = vmatpush3.msra.mxu0 %v2175_v28  ;;  %v185_v47 = vmul.f32 %v2224_v46, %v2224_v46 }
  0xd2   :  { %1838 = vmatpush3.msra.mxu1 %v2177_v29  ;;  %1828 = vmatprep.subr.mxu0 %v2179_v30 }
  0xd3   :  { %1839 = vmatprep.subr.mxu1 %v2183_v32  ;;  %1829 = vmatpush3.msra.mxu0 %v2179_v30  ;;  %v187_v48 = vsel %vm176_vm0, %v185_v47, 0.0 }
  0xd4   :  { %1830 = vmatprep.mubr.msk.f32.mxu0 %vm176_vm0, %v2195_v38  ;;  %1840 = vmatpush3.msra.mxu1 %v2183_v32 }
  0xd5   :  { %1841 = vmatprep.mubr.msk.f32.mxu1 %vm176_vm0, %v2195_v38  ;;  %1831 = vmatmul.mubr.msk.f32.vlgmr.msra.gmra.mxu0 %vm176_vm0, %v2208_v43 }
  0xd6   :  { %1842 = vmatmul.mubr.msk.f32.vlgmr.msra.gmra.mxu1 %vm176_vm0, %v2208_v43  ;;  %1844 = vmatprep.subr.mxu0 %v2181_v31 }
  0xd7   :  { %1855 = vmatprep.subr.mxu1 %v2185_v33  ;;  %1845 = vmatpush3.msra.mxu0 %v2181_v31 }
  0xd8   :  { %1852 = vmatprep.mubr.msk.f32.mxu0 %vm176_vm0, %v2195_v38  ;;  %1856 = vmatpush3.msra.mxu1 %v2185_v33 }
  0xd9   :  { %1863 = vmatprep.mubr.msk.f32.mxu1 %vm176_vm0, %v2195_v38  ;;  %188 = vadd.xlane.f32.xlu0 %v187_v48 }
  0xda   :  { %1846 = vmatprep.subr.mxu0 %v2187_v34  ;;  %1857 = vmatprep.subr.mxu1 %v2189_v35 }
  0xdb   :  { %1847 = vmatpush3.msra.mxu0 %v2187_v34  ;;  %1858 = vmatpush3.msra.mxu1 %v2189_v35  ;;  %v2260_v49 = vpop.trf.xlu1 }
  0xdc   :  { %1848 = vmatprep.subr.mxu0 %v2191_v36  ;;  %1859 = vmatprep.subr.mxu1 %v2193_v37  ;;  %v186_v50 = vmul.f32 %v2260_v49, %v2260_v49 }
  0xdd   :  { %1849 = vmatpush3.msra.mxu0 %v2191_v36  ;;  %1860 = vmatpush3.msra.mxu1 %v2193_v37 }
  0xde   :  { %1850 = vmatprep.subr.mxu0 %v2197_v39  ;;  %1861 = vmatprep.subr.mxu1 %v2206_v42  ;;  %v190_v51 = vsel %vm176_vm0, %v186_v50, 0.0 }
  0xdf   :  { %1851 = vmatpush3.msra.mxu0 %v2197_v39  ;;  %1862 = vmatpush3.msra.mxu1 %v2206_v42 }
  0xe0   :  { %1853 = vmatmul.mubr.msk.f32.vlgmr.msra.gmra.mxu0 %vm176_vm0, %v2208_v43  ;;  %1864 = vmatmul.mubr.msk.f32.vlgmr.msra.gmra.mxu1 %vm176_vm0, %v2208_v43 }
  0xe1   :  { %1866 = vmatprep.subr.mxu0 %v2056_v0  ;;  %1877 = vmatprep.subr.mxu1 %v2149_v20 }
  0xe2   :  { %1867 = vmatpush3.msra.mxu0 %v2056_v0  ;;  %1874 = vmatprep.mubr.msk.f32.mxu0 %vm176_vm0, %v2224_v46 }
  0xe3   :  { %1878 = vmatpush3.msra.mxu1 %v2149_v20  ;;  %1885 = vmatprep.mubr.msk.f32.mxu1 %vm176_vm0, %v2224_v46 }
  0xe4   :  { %1868 = vmatprep.subr.mxu0 %v2068_v2  ;;  %1879 = vmatprep.subr.mxu1 %v2155_v22 }
  0xe5   :  { %1869 = vmatpush3.msra.mxu0 %v2068_v2  ;;  %1880 = vmatpush3.msra.mxu1 %v2155_v22 }
  0xe6   :  { %1870 = vmatprep.subr.mxu0 %v2061_v1  ;;  %1881 = vmatprep.subr.mxu1 %v2152_v21 }
  0xe7   :  { %191 = vadd.xlane.f32.xlu0 %v190_v51  ;;  %1871 = vmatpush3.msra.mxu0 %v2061_v1 }
  0xe8   :  { %1882 = vmatpush3.msra.mxu1 %v2152_v21  ;;  %1872 = vmatprep.subr.mxu0 %v2073_v3 }
  0xe9   :  { %1883 = vmatprep.subr.mxu1 %v2160_v23  ;;  %1873 = vmatpush3.msra.mxu0 %v2073_v3 }
  0xea   :  { %1884 = vmatpush3.msra.mxu1 %v2160_v23  ;;  %1875 = vmatmul.mubr.msk.f32.vlgmr.msra.gmra.mxu0 %vm176_vm0, %v2260_v49 }
  0xeb   :  { %1886 = vmatmul.mubr.msk.f32.vlgmr.msra.gmra.mxu1 %vm176_vm0, %v2260_v49  ;;  %1888 = vmatprep.subr.mxu0 %v2163_v24 }
  0xec   :  { %1899 = vmatprep.subr.mxu1 %v2168_v25  ;;  %1889 = vmatpush3.msra.mxu0 %v2163_v24 }
  0xed   :  { %1896 = vmatprep.mubr.msk.f32.mxu0 %vm176_vm0, %v2224_v46  ;;  %1900 = vmatpush3.msra.mxu1 %v2168_v25 }
  0xee   :  { %1907 = vmatprep.mubr.msk.f32.mxu1 %vm176_vm0, %v2224_v46  ;;  %1890 = vmatprep.subr.mxu0 %v2171_v26 }
  0xef   :  { %1901 = vmatprep.subr.mxu1 %v2173_v27  ;;  %1891 = vmatpush3.msra.mxu0 %v2171_v26 }
  0xf0   :  { %1902 = vmatpush3.msra.mxu1 %v2173_v27  ;;  %1892 = vmatprep.subr.mxu0 %v2175_v28 }
  0xf1   :  { %1903 = vmatprep.subr.mxu1 %v2177_v29  ;;  %1893 = vmatpush3.msra.mxu0 %v2175_v28 }
  0xf2   :  { %1904 = vmatpush3.msra.mxu1 %v2177_v29  ;;  %1894 = vmatprep.subr.mxu0 %v2179_v30 }
  0xf3   :  { %1905 = vmatprep.subr.mxu1 %v2183_v32  ;;  %1895 = vmatpush3.msra.mxu0 %v2179_v30 }
  0xf4   :  { %1906 = vmatpush3.msra.mxu1 %v2183_v32  ;;  %1897 = vmatmul.mubr.msk.f32.vlgmr.msra.gmra.mxu0 %vm176_vm0, %v2260_v49 }
  0xf5   :  { %1908 = vmatmul.mubr.msk.f32.vlgmr.msra.gmra.mxu1 %vm176_vm0, %v2260_v49  ;;  %1910 = vmatprep.subr.mxu0 %v2181_v31 }
  0xf6   :  { %1921 = vmatprep.subr.mxu1 %v2185_v33  ;;  %1911 = vmatpush3.msra.mxu0 %v2181_v31 }
  0xf7   :  { %1918 = vmatprep.mubr.msk.f32.mxu0 %vm176_vm0, %v2224_v46  ;;  %1922 = vmatpush3.msra.mxu1 %v2185_v33 }
  0xf8   :  { %1929 = vmatprep.mubr.msk.f32.mxu1 %vm176_vm0, %v2224_v46  ;;  %1912 = vmatprep.subr.mxu0 %v2187_v34 }
  0xf9   :  { %1923 = vmatprep.subr.mxu1 %v2189_v35  ;;  %1913 = vmatpush3.msra.mxu0 %v2187_v34 }
  0xfa   :  { %1924 = vmatpush3.msra.mxu1 %v2189_v35  ;;  %1914 = vmatprep.subr.mxu0 %v2191_v36 }
  0xfb   :  { %1925 = vmatprep.subr.mxu1 %v2193_v37  ;;  %1915 = vmatpush3.msra.mxu0 %v2191_v36  ;;  %v166_v36 = vld [vmem:[%s2475_s2 + $0x38] sm:$0xff] }
  0xfc   :  { %1926 = vmatpush3.msra.mxu1 %v2193_v37  ;;  %1916 = vmatprep.subr.mxu0 %v2197_v39  ;;  %v2030_v37 = vmov 0.0  }
  0xfd   :  { %1927 = vmatprep.subr.mxu1 %v2206_v42  ;;  %1917 = vmatpush3.msra.mxu0 %v2197_v39 }
  0xfe   :  { %1928 = vmatpush3.msra.mxu1 %v2206_v42  ;;  %1919 = vmatmul.mubr.msk.f32.vlgmr.msra.gmra.mxu0 %vm176_vm0, %v2260_v49 }
  0xff   :  { %1930 = vmatmul.mubr.msk.f32.vlgmr.msra.gmra.mxu1 %vm176_vm0, %v2260_v49  ;;  %1932 = vmatprep.subr.mxu1 %v2030_v37 }
 0x100   :  { %1936 = vmatprep.mubr.msk.f32.mxu1 %vm2031_vm1, %v2030_v37  ;;  %1933 = vmatpush3.msra.mxu1 %v166_v36 }
 0x101   :  { %1946 = vmatprep.subr.mxu0 %v2030_v37  ;;  %1934 = vmatprep.subr.mxu1 %v2030_v37 }
 0x102   :  { %1954 = vmatprep.mubr.msk.f32.mxu0 %vm2031_vm1, %v2030_v37 }
 0x14d   :  { %v179_v52 = vpop.xlane.xlu0 %178 }
 0x14e   :  { %1965 = vrsqrt.f32 %v179_v52 }
 0x159   :  { %v182_v53 = vpop.xlane.xlu1 %181 }
 0x15a   :  { %1967 = vrsqrt.f32 %v182_v53 }
 0x15b   :  { %v2345_v54 = vpop.eup %1965 }
 0x15c   :  { %v195_v55 = vmul.f32 %v2345_v54, %v2195_v38 }
 0x15e   :  { %v197_v56 = vsel %vm176_vm0, %v195_v55, 0.0 }
 0x15f   :  { %v198_v57 = vrot.slane %v197_v56, 4 }
 0x161   :  { %v199_v58 = vadd.f32 %v198_v57, %v197_v56 }
 0x162   :  { %v189_v59 = vpop.xlane.xlu0 %188 }
 0x163   :  { %1969 = vrsqrt.f32 %v189_v59  ;;  %v200_v60 = vrot.slane %v199_v58, 2 }
 0x165   :  { %v201_v61 = vadd.f32 %v200_v60, %v199_v58 }
 0x167   :  { %v2350_v62 = vpop.eup %1967  ;;  %v202_v63 = vrot.slane %v201_v61, 1 }
 0x168   :  { %v196_v0 = vmul.f32 %v2350_v62, %v2208_v43 }
 0x169   :  { %v203_v1 = vadd.f32 %v202_v63, %v201_v61 }
 0x16a   :  { %v204_v2 = vsel %vm176_vm0, %v196_v0, 0.0 }
 0x16b   :  { %v237_v3 = vmul.f32 %v203_v1, %v2224_v46  ;;  %v205_v4 = vrot.slane %v204_v2, 4 }
 0x16d   :  { %v239_v5 = vsel %vm176_vm0, %v237_v3, 0.0  ;;  %v206_v6 = vadd.f32 %v205_v4, %v204_v2 }
 0x16e   :  { %240 = vadd.xlane.f32.xlu1 %v239_v5 }
 0x16f   :  { %v207_v7 = vrot.slane %v206_v6, 2 }
 0x170   :  { %v1970_v8 = vpop.eup %1969  ;;  %v192_v9 = vpop.xlane.xlu0 %191 }
 0x171   :  { %1971 = vrsqrt.f32 %v192_v9  ;;  %v208_v10 = vadd.f32 %v207_v7, %v206_v6  ;;  %v211_v11 = vmul.f32 %v1970_v8, %v2224_v46 }
 0x173   :  { %v209_v12 = vrot.slane %v208_v10, 1  ;;  %v213_v13 = vsel %vm176_vm0, %v211_v11, 0.0 }
 0x174   :  { %v214_v14 = vrot.slane %v213_v13, 4 }
 0x175   :  { %v210_v15 = vadd.f32 %v209_v12, %v208_v10 }
 0x176   :  { %v215_v16 = vadd.f32 %v214_v14, %v213_v13 }
 0x177   :  { %v238_v17 = vmul.f32 %v210_v15, %v2260_v49 }
 0x178   :  { %v216_v18 = vrot.slane %v215_v16, 2 }
 0x179   :  { %v242_v19 = vsel %vm176_vm0, %v238_v17, 0.0 }
 0x17a   :  { %243 = vadd.xlane.f32.xlu0 %v242_v19  ;;  %v217_v20 = vadd.f32 %v216_v18, %v215_v16 }
 0x17c   :  { %v218_v21 = vrot.slane %v217_v20, 1 }
 0x17e   :  { %v1972_v22 = vpop.eup %1971  ;;  %v219_v23 = vadd.f32 %v218_v21, %v217_v20 }
 0x17f   :  { %v212_v24 = vmul.f32 %v1972_v22, %v2260_v49 }
 0x180   :  { %v227_v25 = vmul.f32 %v219_v23, %v2195_v38  ;;  %v165_v38 = vld [vmem:[%s2475_s2 + $0x30] sm:$0xff] }
 0x181   :  { %v220_v26 = vsel %vm176_vm0, %v212_v24, 0.0  ;;  %1935 = vmatpush3.msra.mxu1 %v165_v38 }
 0x182   :  { %v229_v27 = vsel %vm176_vm0, %v227_v25, 0.0  ;;  %v221_v28 = vrot.slane %v220_v26, 4  ;;  %1939 = vmatprep.subr.mxu1 %v2030_v37 }
 0x183   :  { %230 = vadd.xlane.f32.xlu1 %v229_v27 }
 0x184   :  { %v222_v29 = vadd.f32 %v221_v28, %v220_v26 }
 0x186   :  { %v223_v30 = vrot.slane %v222_v29, 2 }
 0x188   :  { %v224_v31 = vadd.f32 %v223_v30, %v222_v29 }
 0x18a   :  { %v225_v32 = vrot.slane %v224_v31, 1 }
 0x18c   :  { %v226_v33 = vadd.f32 %v225_v32, %v224_v31  ;;  %v2381_v57 = vpop.f32.mrf.mxu0  ;;  %v2384_v60 = vpop.f32.mrf.mxu1 }
 0x18e   :  { %v228_v34 = vmul.f32 %v226_v33, %v2208_v43  ;;  %v2386_v0 = vpop.f32.mrf.mxu0  ;;  %v2388_v3 = vpop.f32.mrf.mxu1 }
 0x190   :  { %v232_v35 = vsel %vm176_vm0, %v228_v34, 0.0 }
 0x191   :  { %233 = vadd.xlane.f32.xlu0 %v232_v35 }
 0x195   :  { %v2390_v6 = vpop.f32.mrf.mxu0 }
 0x196   :  { %v2392_v9 = vpop.f32.mrf.mxu1 }
 0x197   :  { %v2394_v11 = vpop.f32.mrf.mxu0 }
 0x198   :  { %v2396_v15 = vpop.f32.mrf.mxu1 }
 0x1a0   :  { %v2399_v19 = vpop.f32.mrf.mxu0  ;;  %v2401_v23 = vpop.f32.mrf.mxu1 }
 0x1a2   :  { %v2403_v26 = vpop.f32.mrf.mxu0  ;;  %v2405_v30 = vpop.f32.mrf.mxu1 }
 0x1aa   :  { %v1876_v31 = vpop.f32.mrf.mxu0 }
 0x1ab   :  { %v1887_v33 = vpop.f32.mrf.mxu1 }
 0x1ac   :  { %v960_v36 = vpop.f32.mrf.mxu0 }
 0x1f7   :  { %v241_v39 = vpop.xlane.xlu1 %240 }
 0x1f8   :  { %v245_v40 = vmul.f32 %v1970_v8, %v241_v39 }
 0x1fa   :  { %v281_v41 = vrot.slane %v245_v40, 4 }
 0x1fc   :  { %v282_v42 = vmax.f32 %v245_v40, %v281_v41  ;;  %v1898_v41 = vpop.f32.mrf.mxu0 }
 0x1fe   :  { %v283_v43 = vrot.slane %v282_v42, 2 }
 0x200   :  { %v284_v44 = vmax.f32 %v282_v42, %v283_v43 }
 0x202   :  { %v285_v45 = vrot.slane %v284_v44, 1 }
 0x203   :  { %v244_v46 = vpop.xlane.xlu0 %243 }
 0x204   :  { %v286_v47 = vmax.f32 %v284_v44, %v285_v45  ;;  %v246_v48 = vmul.f32 %v1972_v22, %v244_v46 }
 0x206   :  { %v293_v49 = vsub.f32 %v245_v40, %v286_v47  ;;  %v287_v50 = vrot.slane %v246_v48, 4  ;;  %v1035_v40 = vpop.f32.mrf.mxu1 }
 0x208   :  { %v295_v51 = vmul.f32 1.442695, %v293_v49  ;;  %v288_v52 = vmax.f32 %v246_v48, %v287_v50  ;;  %v1909_v44 = vpop.f32.mrf.mxu1 }
 0x20a   :  { %1973 = vpow2.f32 %v295_v51  ;;  %v289_v53 = vrot.slane %v288_v52, 2  ;;  %v1191_v51 = vpop.f32.mrf.mxu1 }
 0x20c   :  { %v290_v55 = vmax.f32 %v288_v52, %v289_v53  ;;  %v231_v56 = vpop.xlane.xlu1 %230 }
 0x20d   :  { %v235_v58 = vmul.f32 %v2345_v54, %v231_v56  ;;  %v1931_v56 = vpop.f32.mrf.mxu1 }
 0x20e   :  { %v291_v59 = vrot.slane %v290_v55, 1 }
 0x20f   :  { %v247_v61 = vrot.slane %v235_v58, 4 }
 0x210   :  { %v292_v63 = vmax.f32 %v290_v55, %v291_v59 }
 0x211   :  { %v248_v1 = vmax.f32 %v235_v58, %v247_v61 }
 0x212   :  { %v294_v2 = vsub.f32 %v246_v48, %v292_v63  ;;  %v1116_v48 = vpop.f32.mrf.mxu0 }
 0x213   :  { %v249_v4 = vrot.slane %v248_v1, 2 }
 0x214   :  { %v297_v5 = vmul.f32 1.442695, %v294_v2  ;;  %v1920_v52 = vpop.f32.mrf.mxu0 }
 0x215   :  { %v250_v7 = vmax.f32 %v248_v1, %v249_v4 }
 0x216   :  { %1975 = vpow2.f32 %v297_v5  ;;  %v1278_v61 = vpop.f32.mrf.mxu0  ;;  %v1353_v5 = vpop.f32.mrf.mxu1 }
 0x217   :  { %v1974_v8 = vpop.eup %1973  ;;  %v251_v54 = vrot.slane %v250_v7, 1 }
 0x218   :  { %v299_v10 = vrot.slane %v1974_v8, 4 }
 0x219   :  { %v252_v12 = vmax.f32 %v250_v7, %v251_v54 }
 0x21a   :  { %v300_v13 = vadd.f32 %v1974_v8, %v299_v10  ;;  %v234_v14 = vpop.xlane.xlu0 %233 }
 0x21b   :  { %v259_v16 = vsub.f32 %v235_v58, %v252_v12  ;;  %v236_v17 = vmul.f32 %v2350_v62, %v234_v14 }
 0x21c   :  { %v301_v18 = vrot.slane %v300_v13, 2 }
 0x21d   :  { %v261_v20 = vmul.f32 1.442695, %v259_v16  ;;  %v253_v21 = vrot.slane %v236_v17, 4 }
 0x21e   :  { %v302_v22 = vadd.f32 %v301_v18, %v300_v13 }
 0x21f   :  { %1977 = vpow2.f32 %v261_v20  ;;  %v254_v24 = vmax.f32 %v236_v17, %v253_v21 }
 0x220   :  { %v303_v25 = vrot.slane %v302_v22, 1 }
 0x221   :  { %v255_v27 = vrot.slane %v254_v24, 2 }
 0x222   :  { %v304_v28 = vadd.f32 %v303_v25, %v302_v22 }
 0x223   :  { %v1976_v29 = vpop.eup %1975  ;;  %v256_v62 = vmax.f32 %v254_v24, %v255_v27 }
 0x224   :  { %1979 = vrcp.f32 %v304_v28  ;;  %v305_v32 = vrot.slane %v1976_v29, 4 }
 0x225   :  { %v257_v34 = vrot.slane %v256_v62, 1 }
 0x226   :  { %v306_v35 = vadd.f32 %v1976_v29, %v305_v32 }
 0x227   :  { %v258_v38 = vmax.f32 %v256_v62, %v257_v34 }
 0x228   :  { %v307_v39 = vrot.slane %v306_v35, 2 }
 0x229   :  { %v260_v42 = vsub.f32 %v236_v17, %v258_v38 }
 0x22a   :  { %v308_v43 = vadd.f32 %v307_v39, %v306_v35 }
 0x22b   :  { %v263_v45 = vmul.f32 1.442695, %v260_v42 }
 0x22c   :  { %v1978_v46 = vpop.eup %1977  ;;  %v309_v47 = vrot.slane %v308_v43, 1 }
 0x22d   :  { %v265_v49 = vrot.slane %v1978_v46, 4  ;;  %1981 = vpow2.f32 %v263_v45 }
 0x22e   :  { %v310_v50 = vadd.f32 %v309_v47, %v308_v43 }
 0x22f   :  { %v266_v53 = vadd.f32 %v1978_v46, %v265_v49 }
 0x230   :  { %1983 = vrcp.f32 %v310_v50 }
 0x231   :  { %v1980_v55 = vpop.eup %1979  ;;  %v267_v58 = vrot.slane %v266_v53, 2 }
 0x232   :  { %v313_v59 = vmul.f32 %v1980_v55, %v1974_v8  ;;  %v2410_v8 = vld [vmem:[%s2475_s2 + $0x60] ss:$0 sm:$0xff] }
 0x233   :  { %v268_v63 = vadd.f32 %v267_v58, %v266_v53 }
 0x234   :  { %v1044_v1 = vmul.f32 %v960_v36, %v313_v59  ;;  %v1200_v2 = vmul.f32 %v1116_v48, %v313_v59  ;;  %v1362_v4 = vmul.f32 %v1278_v61, %v313_v59 }
 0x235   :  { %v269_v7 = vrot.slane %v268_v63, 1 }
 0x236   :  { %v1202_v54 = vadd.f32 %v1200_v2, %v1191_v51  ;;  %v1364_v10 = vadd.f32 %v1362_v4, %v1353_v5  ;;  %v1046_v13 = vadd.f32 %v1044_v1, %v1035_v40 }
 0x237   :  { %v270_v12 = vadd.f32 %v269_v7, %v268_v63 }
 0x238   :  { %v1206_v14 = vrot.slane %v1202_v54, 1  ;;  %v1368_v18 = vrot.slane %v1364_v10, 2 }
 0x239   :  { %1985 = vrcp.f32 %v270_v12 }
 0x23a   :  { %v1982_v16 = vpop.eup %1981  ;;  %v1210_v17 = vadd.f32 %v1206_v14, %v1046_v13 }
 0x23b   :  { %v271_v20 = vrot.slane %v1982_v16, 4 }
 0x23c   :  { %v1372_v21 = vadd.f32 %v1368_v18, %v1210_v17 }
 0x23d   :  { %v1984_v22 = vpop.eup %1983  ;;  %v272_v24 = vadd.f32 %v1982_v16, %v271_v20 }
 0x23e   :  { %v314_v25 = vmul.f32 %v1984_v22, %v1976_v29  ;;  %v1374_v27 = vadd.f32 %v2410_v8, %v1372_v21 }
 0x23f   :  { %v273_v28 = vrot.slane %v272_v24, 2 }
 0x240   :  { %v1045_v62 = vmul.f32 %v1876_v31, %v314_v25  ;;  %v1201_v32 = vmul.f32 %v1898_v41, %v314_v25  ;;  %v1363_v34 = vmul.f32 %v1920_v52, %v314_v25  ;;  %1987 = vtanh.f32 %v1374_v27 }
 0x241   :  { %v274_v35 = vadd.f32 %v273_v28, %v272_v24  ;;  %v164_v24 = vld [vmem:[%s2475_s2 + $0x28] sm:$0xff] }
 0x242   :  { %v1203_v36 = vadd.f32 %v1909_v44, %v1201_v32  ;;  %v1365_v38 = vadd.f32 %v1931_v56, %v1363_v34  ;;  %v1047_v40 = vadd.f32 %v1887_v33, %v1045_v62 }
 0x243   :  { %v275_v39 = vrot.slane %v274_v35, 1 }
 0x244   :  { %v1207_v42 = vrot.slane %v1203_v36, 1  ;;  %v1369_v48 = vrot.slane %v1365_v38, 2 }
 0x245   :  { %v276_v43 = vadd.f32 %v275_v39, %v274_v35 }
 0x246   :  { %v1986_v45 = vpop.eup %1985  ;;  %v1211_v47 = vadd.f32 %v1207_v42, %v1047_v40 }
 0x247   :  { %v279_v49 = vmul.f32 %v1986_v45, %v1978_v46  ;;  %1989 = vrcp.f32 %v276_v43 }
 0x248   :  { %v1373_v29 = vadd.f32 %v1369_v48, %v1211_v47 }
 0x249   :  { %v487_v50 = vmul.f32 %v2386_v0, %v279_v49  ;;  %v667_v31 = vmul.f32 %v2394_v11, %v279_v49  ;;  %v853_v41 = vmul.f32 %v2403_v26, %v279_v49  ;;  %v170_v49 = vld [vmem:[%s2475_s2 + $0x58] sm:$0xff] }
 0x24a   :  { %v1375_v51 = vadd.f32 %v2410_v8, %v1373_v29  ;;  %v169_v29 = vld [vmem:[%s2475_s2 + $0x50] sm:$0xff]  ;;  %1947 = vmatpush3.msra.mxu0 %v170_v49 }
 0x24b   :  { %v669_v44 = vadd.f32 %v667_v31, %v2396_v15  ;;  %v855_v33 = vadd.f32 %v853_v41, %v2405_v30  ;;  %v489_v53 = vadd.f32 %v487_v50, %v2388_v3  ;;  %1948 = vmatprep.subr.mxu0 %v2030_v37  ;;  %v168_v50 = vld [vmem:[%s2475_s2 + $0x48] sm:$0xff]  ;;  %v167_v31 = vld [vmem:[%s2475_s2 + $0x40] sm:$0xff] }
 0x24c   :  { %1991 = vtanh.f32 %v1375_v51  ;;  %1949 = vmatpush3.msra.mxu0 %v169_v29 }
 0x24d   :  { %v1988_v52 = vpop.eup %1987  ;;  %v673_v46 = vrot.slane %v669_v44, 1  ;;  %v859_v0 = vrot.slane %v855_v33, 2  ;;  %1950 = vmatprep.subr.mxu0 %v2030_v37  ;;  %v1714_v44 = vld [vmem:[%s2475_s2 + $0x61] ss:$0 sm:$0xff] }
 0x24e   :  { %v1378_v55 = vsel %vm873_vm2, %v1988_v52, -inf  ;;  %1951 = vmatpush3.msra.mxu0 %v168_v50 }
 0x24f   :  { %v677_v56 = vadd.f32 %v673_v46, %v489_v53  ;;  %v1379_v58 = vrot.slane %v1378_v55, 4  ;;  %1952 = vmatprep.subr.mxu0 %v2030_v37 }
 0x250   :  { %1953 = vmatpush3.msra.mxu0 %v167_v31 }
 0x251   :  { %v863_v11 = vadd.f32 %v859_v0, %v677_v56  ;;  %v1380_v63 = vmax.f32 %v1378_v55, %v1379_v58  ;;  %v1715_v56 = vld [vmem:[%s2475_s2 + $0x62] ss:$0 sm:$0xff] }
 0x253   :  { %v869_v26 = vadd.f32 %v2410_v8, %v863_v11  ;;  %v1381_v2 = vrot.slane %v1380_v63, 2 }
 0x254   :  { %v1990_v59 = vpop.eup %1989 }
 0x255   :  { %v280_v61 = vmul.f32 %v1990_v59, %v1982_v16  ;;  %1993 = vtanh.f32 %v869_v26  ;;  %v1382_v13 = vmax.f32 %v1380_v63, %v1381_v2 }
 0x257   :  { %v488_v15 = vmul.f32 %v2381_v57, %v280_v61  ;;  %v668_v30 = vmul.f32 %v2390_v6, %v280_v61  ;;  %v854_v1 = vmul.f32 %v2399_v19, %v280_v61  ;;  %v1383_v18 = vrot.slane %v1382_v13, 1 }
 0x259   :  { %v1992_v3 = vpop.eup %1991  ;;  %v670_v4 = vadd.f32 %v2392_v9, %v668_v30  ;;  %v856_v5 = vadd.f32 %v2401_v23, %v854_v1  ;;  %v490_v10 = vadd.f32 %v2384_v60, %v488_v15  ;;  %v1384_v23 = vmax.f32 %v1382_v13, %v1383_v18 }
 0x25a   :  { %v1385_v7 = vsel %vm873_vm2, %v1992_v3, -inf }
 0x25b   :  { %v1386_v54 = vrot.slane %v1385_v7, 4  ;;  %v674_v12 = vrot.slane %v670_v4, 1  ;;  %v860_v57 = vrot.slane %v856_v5, 2 }
 0x25d   :  { %v1387_v14 = vmax.f32 %v1385_v7, %v1386_v54  ;;  %v678_v16 = vadd.f32 %v674_v12, %v490_v10 }
 0x25f   :  { %v1388_v17 = vrot.slane %v1387_v14, 2  ;;  %v864_v6 = vadd.f32 %v860_v57, %v678_v16 }
 0x261   :  { %v1389_v19 = vmax.f32 %v1387_v14, %v1388_v17  ;;  %v870_v20 = vadd.f32 %v2410_v8, %v864_v6  ;;  %v163_v8 = vld [vmem:[%s2475_s2 + $0x20] sm:$0xff]  ;;  %s2032_s2 = smov [#allocation2]  }
 0x262   :  { %v1994_v21 = vpop.eup %1993  ;;  %s1679_s23 = sshll.u32 %s2032_s2, 4  ;;  %s1680_s23 = int_to_ptr.vmem [resolvable:$true] %s1679_s23 }
 0x263   :  { %v1390_v9 = vrot.slane %v1389_v19, 1  ;;  %1995 = vtanh.f32 %v870_v20  ;;  %v874_v60 = vsel %vm873_vm2, %v1994_v21, -inf  ;;  %s2003_s24 = scalar_lea.vmem %s1680_s23, 32  ;;  %p2008_p1 = scmp.lt.s32.totalorder %s1680_s23, %s1680_s23 }
 0x264   :  { %v875_v27 = vrot.slane %v874_v60, 4  ;;  %p2004_p0 = scmp.ne.s32.totalorder %s1680_s23, %s2003_s24  ;;  %p2009_p2 = scmp.lt.s32.totalorder %s2003_s24, %s2003_s24 }
 0x265   :  { %v1391_v22 = vmax.f32 %v1389_v19, %v1390_v9 }
 0x266   :  { %v876_v28 = vmax.f32 %v874_v60, %v875_v27  ;;  %p2010_p3 = por %p2009_p2, %p2008_p1 }
 0x267   :  { %v1395_v25 = vsel %vm1394_vm3, %v1391_v22, %v1384_v23 }
 0x268   :  { %1937 = vmatmul.mubr.msk.f32.vlgmr.msra.gmra.mxu1 %vm1396_vm4, %v1395_v25  ;;  %v877_v32 = vrot.slane %v876_v28, 2  ;;  %p2011_p4 = pnand %p2010_p3, %p2004_p0 }
 0x269   :  { %1940 = vmatpush3.msra.mxu1 %v164_v24  ;;  %1943 = vmatprep.mubr.msk.f32.mxu1 %vm2031_vm1, %v2030_v37 }
 0x26a   :  { %1941 = vmatprep.subr.mxu1 %v2030_v37  ;;  %v878_v36 = vmax.f32 %v876_v28, %v877_v32 }
 0x26b   :  { %1942 = vmatpush3.msra.mxu1 %v163_v8 }
 0x26c   :  { %v879_v40 = vrot.slane %v878_v36, 1 }
 0x26e   :  { %v880_v45 = vmax.f32 %v878_v36, %v879_v40 }
 0x270   :  { %v1996_v62 = vpop.eup %1995 }
 0x271   :  { %v881_v34 = vsel %vm873_vm2, %v1996_v62, -inf }
 0x272   :  { %v882_v35 = vrot.slane %v881_v34, 4 }
 0x274   :  { %v883_v38 = vmax.f32 %v881_v34, %v882_v35 }
 0x276   :  { %v884_v39 = vrot.slane %v883_v38, 2 }
 0x278   :  { %v885_v42 = vmax.f32 %v883_v38, %v884_v39 }
 0x27a   :  { %v886_v43 = vrot.slane %v885_v42, 1 }
 0x27c   :  { %v887_v47 = vmax.f32 %v885_v42, %v886_v43 }
 0x27e   :  { %v1471_v48 = vsel %vm1394_vm3, %v887_v47, %v880_v45 }
 0x27f   :  { %1944 = vmatmul.mubr.msk.f32.vlgmr.msra.gmra.mxu1 %vm1396_vm4, %v1471_v48 }
 0x328   :  { %v1465_v41 = vpop.f32.mrf.mxu1 }
 0x32a   :  { %v1938_v51 = vpop.f32.mrf.mxu1 }
 0x33f   :  { %v1540_v33 = vpop.f32.mrf.mxu1 }
 0x340   :  { %v1541_v52 = vadd.f32 %v1540_v33, %v1465_v41 }
 0x341   :  { %v1945_v53 = vpop.f32.mrf.mxu1 }
 0x342   :  { %v1548_v46 = vadd.f32 %v1714_v44, %v1541_v52 }
 0x344   :  { %1997 = vtanh.f32 %v1548_v46 }
 0x351   :  { %v1998_v55 = vpop.eup %1997 }
 0x352   :  { %1955 = vmatmul.mubr.msk.f32.vlgmr.msra.gmra.mxu0 %vm176_vm0, %v1998_v55 }
 0x412   :  { %v1623_v37 = vpop.f32.mrf.mxu0 }
 0x413   :  { %v1624_v0 = vadd.f32 %v1715_v56, %v1623_v37 }
 0x414   :  { %v1956_v58 = vpop.f32.mrf.mxu0 }
 0x415   :  { %v1628_v11 = vsel %vm1627_vm5, %v1624_v0, -inf }
 0x416   :  { %1629 = vmax.xlane.f32.xlu1 %v1628_v11 }
 0x49f   :  { %v1630_v26 = vpop.xlane.xlu1 %1629 }
 0x4a0   :  { %v1631_v59 = vsub.f32 %v1624_v0, %v1630_v26 }
 0x4a2   :  { %v1632_v61 = vmul.f32 1.442695, %v1631_v59 }
 0x4a4   :  { %1999 = vpow2.f32 %v1632_v61 }
 0x4b1   :  { %v2000_v63 = vpop.eup %1999 }
 0x4b2   :  { %v1634_v15 = vsel %vm1627_vm5, %v2000_v63, 0.0 }
 0x4b3   :  { %1635 = vadd.xlane.f32.xlu0 %v1634_v15 }
 0x53c   :  { %v1636_v30 = vpop.xlane.xlu0 %1635 }
 0x53d   :  { %2001 = vlog2.f32 %v1636_v30 }
 0x54a   :  { %v2002_v1 = vpop.eup %2001 }
 0x54b   :  { %v1638_v3 = vmul.f32 0.6931472, %v2002_v1 }
 0x54d   :  { %v1639_v2 = vsub.f32 %v1631_v59, %v1638_v3 }
 0x54f   :  { %1640 = vxpose.xlu1.b32.start.end [1/1] (short) (narrow) %v1639_v2, 8 }
 0x5cb   :  { %v1656_v4 = vpop.trf.xlu1 }
 0x5cc   :  { %1672 = vst.msk [vmem:[#allocation2] sm:$0x3] %vm1627_vm5, %v1656_v4 }
 0x5cd   :  { %2014 = shalt.err (!%p2011_p4)
}
 0x5ce   :  { %1682 = dma.vmem_to_hbm [thread:$0]  %s1680_s23, 32, %s2476_s3, [#allocation3]  }
 0x5cf   :  { %2023 = dma.done.wait [#allocation3], 32  }
 0x5d0   :  { %2024 = vsyncadd [#allocation3], 4294967264 }
 0x5d1   :  { %1686 = vsyncpa [#allocation3], 1 }

</bundles_post_ra>
